<compile_context>
chip_gen: v5e
topology: v5e:2x2
jax: 0.10.0
libtpu: 0.0.40
codegen_flags: <defaults>
</compile_context>

<pallas_src>
import math
from functools import partial

import jax
import jax.numpy as jnp
from jax.experimental import pallas as pl
from jax.experimental.pallas import tpu as pltpu


def smha_kernel(xq_ref, xk_ref, xv_ref, pack_ref, amask_ref, out_ref,
                *, heads, d, rows0):
    """One grid step = one batch element.

    xq/xk/xv_ref : [1, rows0, d]   activation slabs (rows0 = N*t)
    pack_ref     : [4*d + 8 + heads*rows0, d]
                   rows [0,d)=Wq/sqrt(hd), [d,2d)=Wk, [2d,3d)=Wv, [3d,4d)=Wo,
                   row 4d = fc_out bias, rows [4d+8, ...) = per-head lane mask
    amask_ref    : [heads*rows0, heads*rows0] additive mask
                   (0 where same head-block AND same time-step, else -1e30)
    out_ref      : [1, rows0, d]
    """
    R = heads * rows0

    o_wq, o_wk, o_wv, o_wo = 0, d, 2 * d, 3 * d
    o_bo = 4 * d
    o_lm = 4 * d + 8

    wq = pack_ref[o_wq:o_wq + d]          # pre-scaled by 1/sqrt(head_dim)
    wk = pack_ref[o_wk:o_wk + d]
    wv = pack_ref[o_wv:o_wv + d]
    wo = pack_ref[o_wo:o_wo + d]
    bo = pack_ref[o_bo:o_bo + 1]          # [1, d]
    lmask = pack_ref[o_lm:o_lm + R]       # [R, d]  per-head lane mask

    # Head-stack the activation slab along sublanes: row block h of the
    # replicated slab belongs to head h.
    xq = xq_ref[0].astype(jnp.float32)    # [rows0, d]
    xk = xk_ref[0].astype(jnp.float32)
    xv = xv_ref[0].astype(jnp.float32)
    xq_rep = jnp.concatenate([xq] * heads, axis=0)   # [R, d]
    xk_rep = jnp.concatenate([xk] * heads, axis=0)
    xv_rep = jnp.concatenate([xv] * heads, axis=0)

    # Full-width projections; lane-mask Q and V so each head block only sees
    # (and only produces) its own head_dim lanes.
    q = jnp.dot(xq_rep, wq, preferred_element_type=jnp.float32) * lmask
    k = jnp.dot(xk_rep, wk, preferred_element_type=jnp.float32)
    v = jnp.dot(xv_rep, wv, preferred_element_type=jnp.float32) * lmask

    # One [R, R] masked score matrix; only the block-diagonal (same head) and
    # same-time entries survive -> per-(head, time) softmax over the N nodes.
    s = jnp.dot(q, k.T, preferred_element_type=jnp.float32) + amask_ref[...]
    s = s - jnp.max(s, axis=-1, keepdims=True)
    p = jnp.exp(s)
    inv = pl.reciprocal(jnp.sum(p, axis=-1, keepdims=True), approx=True)
    a = p * inv

    # Context: row block h holds head h's context restricted to its own lanes,
    # so a single ctx @ Wo gives each head's contribution to fc_out; summing
    # the `heads` sublane blocks completes the output projection.
    ctx = jnp.dot(a, v, preferred_element_type=jnp.float32)        # [R, d]
    proj = jnp.dot(ctx, wo, preferred_element_type=jnp.float32)    # [R, d]

    acc = proj[0:rows0]
    for h in range(1, heads):                                      # unrolled
        acc = acc + proj[h * rows0:(h + 1) * rows0]

    out_ref[0] = (acc + bo).astype(out_ref.dtype)


def smha_forward(input_Q, input_K, input_V, params, *, heads, factor=5):
    B, N, t, d = input_Q.shape
    head_dim = d // heads
    rows0 = N * t
    R = heads * rows0

    # Dense-attention reduction of ProbSparse is exact only in this regime.
    assert factor * math.ceil(math.log(N)) >= N, \
        "randomized ProbSparse path not implemented"

    # Flatten (N, t) -> rows; the kernel sees a [N*t, d] slab per batch.
    xq = input_Q.reshape(B, rows0, d)
    xk = input_K.reshape(B, rows0, d)
    xv = input_V.reshape(B, rows0, d)

    # --- precomputed masks -------------------------------------------------
    row = jnp.arange(R, dtype=jnp.int32)
    head_of_row = row // rows0
    tau_of_row = row % t
    lane_head = jnp.arange(d, dtype=jnp.int32) // head_dim
    lane_mask = (head_of_row[:, None] == lane_head[None, :]).astype(jnp.float32)

    same = (head_of_row[:, None] == head_of_row[None, :]) & \
           (tau_of_row[:, None] == tau_of_row[None, :])
    add_mask = jnp.where(same, 0.0, -1e30).astype(jnp.float32)      # [R, R]

    # --- single packed weight/bias/lane-mask operand -----------------------
    scale = 1.0 / math.sqrt(head_dim)
    bo_pad = jnp.zeros((8, d), jnp.float32).at[0].set(params['bo'][0])
    pack = jnp.concatenate(
        [params['wq'].astype(jnp.float32) * scale,
         params['wk'].astype(jnp.float32),
         params['wv'].astype(jnp.float32),
         params['wo'].astype(jnp.float32),
         bo_pad,
         lane_mask], axis=0)                                        # [264, d]
    P = pack.shape[0]

    kernel = partial(smha_kernel, heads=heads, d=d, rows0=rows0)

    act_spec = pl.BlockSpec((1, rows0, d), lambda b: (b, 0, 0))

    out = pl.pallas_call(
        kernel,
        out_shape=jax.ShapeDtypeStruct((B, rows0, d), jnp.float32),
        grid_spec=pltpu.PrefetchScalarGridSpec(
            num_scalar_prefetch=0,
            grid=(B,),
            in_specs=[act_spec, act_spec, act_spec,
                      pl.BlockSpec((P, d), lambda b: (0, 0)),   # resident
                      pl.BlockSpec((R, R), lambda b: (0, 0))],  # resident
            out_specs=pl.BlockSpec((1, rows0, d), lambda b: (b, 0, 0)),
        ),
        compiler_params=pltpu.CompilerParams(
            dimension_semantics=("parallel",)),   # v7x: one batch per TC
    )(xq, xk, xv, pack, add_mask)

    return out.reshape(B, N, t, d)


def reference_forward(input_Q, input_K, input_V, params, *, heads):
    """Pure-JAX reference mirroring the PyTorch forward (dense regime, eval)."""
    B, N, t, d = input_Q.shape
    hd = d // heads

    Q = input_Q @ params['wq']
    K = input_K @ params['wk']
    V = input_V @ params['wv']

    def split(a):   # [B,N,t,d] -> [B,H,t,N,hd]  (== .view(...).transpose(1,3))
        return a.reshape(B, N, t, heads, hd).transpose(0, 3, 2, 1, 4)

    Qh, Kh, Vh = split(Q), split(K), split(V)
    s = jnp.einsum('bhtnd,bhtmd->bhtnm', Qh, Kh) / math.sqrt(hd)
    a = jax.nn.softmax(s, axis=-1)
    ctx = jnp.einsum('bhtnm,bhtmd->bhtnd', a, Vh)          # [B,H,t,N,hd]
    ctx = ctx.transpose(0, 3, 2, 1, 4).reshape(B, N, t, heads * hd)
    return ctx @ params['wo'] + params['bo'][0]


def make_params(key, embed_size):
    d = embed_size
    ks = jax.random.split(key, 5)
    n = lambda k, shape, s: (s * jax.random.normal(k, shape)).astype(jnp.float32)
    return {
        # [in, out] layouts (i.e. nn.Linear.weight.T)
        'wq': n(ks[0], (d, d), 0.05),
        'wk': n(ks[1], (d, d), 0.05),
        'wv': n(ks[2], (d, d), 0.05),
        'wo': n(ks[3], (d, d), 0.05),
        'bo': n(ks[4], (1, d), 0.05),
    }


if __name__ == "__main__":
    B, N, t, d = 2, 4, 8, 32
    heads = 4

    key = jax.random.PRNGKey(0)
    kq, kk, kv, kp = jax.random.split(key, 4)
    input_Q = jax.random.normal(kq, (B, N, t, d), dtype=jnp.float32)
    input_K = jax.random.normal(kk, (B, N, t, d), dtype=jnp.float32)
    input_V = jax.random.normal(kv, (B, N, t, d), dtype=jnp.float32)

    params = make_params(kp, d)

    out = smha_forward(input_Q, input_K, input_V, params, heads=heads)
    out = jax.block_until_ready(out)

    ref = reference_forward(input_Q, input_K, input_V, params, heads=heads)
    assert out.shape == (B, N, t, d)
    err = jnp.max(jnp.abs(out - ref))
    assert jnp.allclose(out, ref, rtol=1e-3, atol=1e-3), f"max abs diff {err}"

    print("KERNEL_OK")
</pallas_src>

<mosaic_0001>
module attributes {stable_mosaic.version = 11 : i64} {
  func.func @smha_kernel(%arg0: i32, %arg1: memref<1x32x32xf32, #tpu.memory_space<vmem>>, %arg2: memref<1x32x32xf32, #tpu.memory_space<vmem>>, %arg3: memref<1x32x32xf32, #tpu.memory_space<vmem>>, %arg4: memref<264x32xf32, #tpu.memory_space<vmem>>, %arg5: memref<128x128xf32, #tpu.memory_space<vmem>>, %arg6: memref<1x32x32xf32, #tpu.memory_space<vmem>>) attributes {dimension_semantics = [#tpu.dimension_semantics<parallel>], iteration_bounds = array<i64: 2>, scalar_prefetch = 0 : i64, scratch_operands = 0 : i64, tpu.core_type = #tpu.core_type<tc>, window_params = [{transform_indices = @transform_0, window_bounds = array<i64: 1, 32, 32>}, {transform_indices = @transform_1, window_bounds = array<i64: 1, 32, 32>}, {transform_indices = @transform_2, window_bounds = array<i64: 1, 32, 32>}, {pipeline_mode = #tpu.pipeline_mode<synchronous>, transform_indices = @transform_3, window_bounds = array<i64: 264, 32>}, {pipeline_mode = #tpu.pipeline_mode<synchronous>, transform_indices = @transform_4, window_bounds = array<i64: 128, 128>}, {transform_indices = @transform_5, window_bounds = array<i64: 1, 32, 32>}]} {
    %c0 = arith.constant 0 : index
    %c0_0 = arith.constant 0 : index
    %0 = vector.load %arg4[%c0, %c0_0] : memref<264x32xf32, #tpu.memory_space<vmem>>, vector<32x32xf32>
    %c32 = arith.constant 32 : index
    %c0_1 = arith.constant 0 : index
    %1 = vector.load %arg4[%c32, %c0_1] : memref<264x32xf32, #tpu.memory_space<vmem>>, vector<32x32xf32>
    %c64 = arith.constant 64 : index
    %c0_2 = arith.constant 0 : index
    %2 = vector.load %arg4[%c64, %c0_2] : memref<264x32xf32, #tpu.memory_space<vmem>>, vector<32x32xf32>
    %c96 = arith.constant 96 : index
    %c0_3 = arith.constant 0 : index
    %3 = vector.load %arg4[%c96, %c0_3] : memref<264x32xf32, #tpu.memory_space<vmem>>, vector<32x32xf32>
    %c128 = arith.constant 128 : index
    %c0_4 = arith.constant 0 : index
    %4 = vector.load %arg4[%c128, %c0_4] : memref<264x32xf32, #tpu.memory_space<vmem>>, vector<1x32xf32>
    %c136 = arith.constant 136 : index
    %c0_5 = arith.constant 0 : index
    %5 = vector.load %arg4[%c136, %c0_5] : memref<264x32xf32, #tpu.memory_space<vmem>>, vector<128x32xf32>
    %c0_6 = arith.constant 0 : index
    %c0_7 = arith.constant 0 : index
    %c0_8 = arith.constant 0 : index
    %6 = vector.load %arg1[%c0_6, %c0_7, %c0_8] : memref<1x32x32xf32, #tpu.memory_space<vmem>>, vector<1x32x32xf32>
    %7 = vector.shape_cast %6 : vector<1x32x32xf32> to vector<32x32xf32>
    %c0_9 = arith.constant 0 : index
    %c0_10 = arith.constant 0 : index
    %c0_11 = arith.constant 0 : index
    %8 = vector.load %arg2[%c0_9, %c0_10, %c0_11] : memref<1x32x32xf32, #tpu.memory_space<vmem>>, vector<1x32x32xf32>
    %9 = vector.shape_cast %8 : vector<1x32x32xf32> to vector<32x32xf32>
    %c0_12 = arith.constant 0 : index
    %c0_13 = arith.constant 0 : index
    %c0_14 = arith.constant 0 : index
    %10 = vector.load %arg3[%c0_12, %c0_13, %c0_14] : memref<1x32x32xf32, #tpu.memory_space<vmem>>, vector<1x32x32xf32>
    %11 = vector.shape_cast %10 : vector<1x32x32xf32> to vector<32x32xf32>
    %12 = tpu.concatenate %7, %7, %7, %7 in 0 : vector<32x32xf32>, vector<32x32xf32>, vector<32x32xf32>, vector<32x32xf32> -> vector<128x32xf32>
    %13 = tpu.concatenate %9, %9, %9, %9 in 0 : vector<32x32xf32>, vector<32x32xf32>, vector<32x32xf32>, vector<32x32xf32> -> vector<128x32xf32>
    %14 = tpu.concatenate %11, %11, %11, %11 in 0 : vector<32x32xf32>, vector<32x32xf32>, vector<32x32xf32>, vector<32x32xf32> -> vector<128x32xf32>
    %cst = arith.constant dense<0.000000e+00> : vector<128x32xf32>
    %15 = tpu.matmul %12, %0, %cst {dimension_numbers = #tpu.dot_dimension_numbers<[1], [0], [0], [1], [0, 0, 1, 1], [], []>} : vector<128x32xf32>, vector<32x32xf32>, vector<128x32xf32> -> vector<128x32xf32>
    %16 = arith.mulf %15, %5 : vector<128x32xf32>
    %cst_15 = arith.constant dense<0.000000e+00> : vector<128x32xf32>
    %17 = tpu.matmul %13, %1, %cst_15 {dimension_numbers = #tpu.dot_dimension_numbers<[1], [0], [0], [1], [0, 0, 1, 1], [], []>} : vector<128x32xf32>, vector<32x32xf32>, vector<128x32xf32> -> vector<128x32xf32>
    %cst_16 = arith.constant dense<0.000000e+00> : vector<128x32xf32>
    %18 = tpu.matmul %14, %2, %cst_16 {dimension_numbers = #tpu.dot_dimension_numbers<[1], [0], [0], [1], [0, 0, 1, 1], [], []>} : vector<128x32xf32>, vector<32x32xf32>, vector<128x32xf32> -> vector<128x32xf32>
    %19 = arith.mulf %18, %5 : vector<128x32xf32>
    %20 = tpu.transpose %17, [1, 0] : vector<128x32xf32> -> vector<32x128xf32>
    %cst_17 = arith.constant dense<0.000000e+00> : vector<128x128xf32>
    %21 = tpu.matmul %16, %20, %cst_17 {dimension_numbers = #tpu.dot_dimension_numbers<[1], [0], [0], [1], [0, 0, 1, 1], [], []>} : vector<128x32xf32>, vector<32x128xf32>, vector<128x128xf32> -> vector<128x128xf32>
    %c0_18 = arith.constant 0 : index
    %c0_19 = arith.constant 0 : index
    %22 = vector.load %arg5[%c0_18, %c0_19] : memref<128x128xf32, #tpu.memory_space<vmem>>, vector<128x128xf32>
    %23 = arith.addf %21, %22 : vector<128x128xf32>
    %cst_20 = arith.constant dense<0xFF800000> : vector<128xf32>
    %24 = vector.multi_reduction <maximumf>, %23, %cst_20 [1] : vector<128x128xf32> to vector<128xf32>
    %25 = vector.shape_cast %24 : vector<128xf32> to vector<128x1xf32>
    %26 = vector.broadcast %25 : vector<128x1xf32> to vector<128x128xf32>
    %27 = arith.subf %23, %26 : vector<128x128xf32>
    %28 = math.exp %27 : vector<128x128xf32>
    %cst_21 = arith.constant dense<0.000000e+00> : vector<128xf32>
    %29 = vector.multi_reduction <add>, %28, %cst_21 [1] : vector<128x128xf32> to vector<128xf32>
    %30 = vector.shape_cast %29 : vector<128xf32> to vector<128x1xf32>
    %31 = tpu.reciprocal %30 {approx = true} : vector<128x1xf32> -> vector<128x1xf32>
    %32 = vector.broadcast %31 : vector<128x1xf32> to vector<128x128xf32>
    %33 = arith.mulf %28, %32 : vector<128x128xf32>
    %cst_22 = arith.constant dense<0.000000e+00> : vector<128x32xf32>
    %34 = tpu.matmul %33, %19, %cst_22 {dimension_numbers = #tpu.dot_dimension_numbers<[1], [0], [0], [1], [0, 0, 1, 1], [], []>} : vector<128x128xf32>, vector<128x32xf32>, vector<128x32xf32> -> vector<128x32xf32>
    %cst_23 = arith.constant dense<0.000000e+00> : vector<128x32xf32>
    %35 = tpu.matmul %34, %3, %cst_23 {dimension_numbers = #tpu.dot_dimension_numbers<[1], [0], [0], [1], [0, 0, 1, 1], [], []>} : vector<128x32xf32>, vector<32x32xf32>, vector<128x32xf32> -> vector<128x32xf32>
    %36 = vector.extract_strided_slice %35 {offsets = [0, 0], sizes = [32, 32], strides = [1, 1]} : vector<128x32xf32> to vector<32x32xf32>
    %37 = vector.extract_strided_slice %35 {offsets = [32, 0], sizes = [32, 32], strides = [1, 1]} : vector<128x32xf32> to vector<32x32xf32>
    %38 = arith.addf %36, %37 : vector<32x32xf32>
    %39 = vector.extract_strided_slice %35 {offsets = [64, 0], sizes = [32, 32], strides = [1, 1]} : vector<128x32xf32> to vector<32x32xf32>
    %40 = arith.addf %38, %39 : vector<32x32xf32>
    %41 = vector.extract_strided_slice %35 {offsets = [96, 0], sizes = [32, 32], strides = [1, 1]} : vector<128x32xf32> to vector<32x32xf32>
    %42 = arith.addf %40, %41 : vector<32x32xf32>
    %43 = vector.broadcast %4 : vector<1x32xf32> to vector<32x32xf32>
    %44 = arith.addf %42, %43 : vector<32x32xf32>
    %c0_24 = arith.constant 0 : index
    %c0_25 = arith.constant 0 : index
    %c0_26 = arith.constant 0 : index
    %45 = vector.load %arg6[%c0_24, %c0_25, %c0_26] : memref<1x32x32xf32, #tpu.memory_space<vmem>>, vector<1x32x32xf32>
    %46 = vector.shape_cast %45 : vector<1x32x32xf32> to vector<32x32xf32>
    %47 = vector.shape_cast %44 : vector<32x32xf32> to vector<1x32x32xf32>
    tpu.vector_store %arg6[%c0_24, %c0_25, %c0_26], %47 {strides = array<i32>} : memref<1x32x32xf32, #tpu.memory_space<vmem>>, vector<1x32x32xf32>,
    return
  }
  func.func @transform_0(%arg0: i32) -> (i32, i32, i32) {
    %c0_i32 = arith.constant 0 : i32
    %c0_i32_0 = arith.constant 0 : i32
    %c0_i32_1 = arith.constant 0 : i32
    return %arg0, %c0_i32, %c0_i32_0 : i32, i32, i32
  }
  func.func @transform_1(%arg0: i32) -> (i32, i32, i32) {
    %c0_i32 = arith.constant 0 : i32
    %c0_i32_0 = arith.constant 0 : i32
    %c0_i32_1 = arith.constant 0 : i32
    return %arg0, %c0_i32, %c0_i32_0 : i32, i32, i32
  }
  func.func @transform_2(%arg0: i32) -> (i32, i32, i32) {
    %c0_i32 = arith.constant 0 : i32
    %c0_i32_0 = arith.constant 0 : i32
    %c0_i32_1 = arith.constant 0 : i32
    return %arg0, %c0_i32, %c0_i32_0 : i32, i32, i32
  }
  func.func @transform_3(%arg0: i32) -> (i32, i32) {
    %c0_i32 = arith.constant 0 : i32
    %c0_i32_0 = arith.constant 0 : i32
    %c0_i32_1 = arith.constant 0 : i32
    return %c0_i32, %c0_i32_0 : i32, i32
  }
  func.func @transform_4(%arg0: i32) -> (i32, i32) {
    %c0_i32 = arith.constant 0 : i32
    %c0_i32_0 = arith.constant 0 : i32
    %c0_i32_1 = arith.constant 0 : i32
    return %c0_i32, %c0_i32_0 : i32, i32
  }
  func.func @transform_5(%arg0: i32) -> (i32, i32, i32) {
    %c0_i32 = arith.constant 0 : i32
    %c0_i32_0 = arith.constant 0 : i32
    %c0_i32_1 = arith.constant 0 : i32
    return %arg0, %c0_i32, %c0_i32_0 : i32, i32, i32
  }
}

</mosaic_0001>

<bundles_post_ra>
// kernel: tpu_custom_call.1
= control target key start
LH: loop header
LB: loop body
LE: loop exit
PB: predicated region body
PF: predicated region fallthrough
CT: control target
= control target key end

     0   :  { %10 = vsyncpa [#allocation3], 0  ;;  %s2063_s0 = inlined_call_operand.vmem [shape: f32[2,32,32], index: 0, kind: input, shape index: {}]   ;;  %s2064_s1 = inlined_call_operand.vmem [shape: f32[2,32,32], index: 1, kind: input, shape index: {}]   ;;  %s2065_s2 = inlined_call_operand.vmem [shape: f32[2,32,32], index: 2, kind: input, shape index: {}]   ;;  %s2066_s3 = inlined_call_operand.vmem [shape: f32[264,32], index: 3, kind: input, shape index: {}]   ;;  %s2067_s4 = inlined_call_operand.vmem [shape: f32[128,128], index: 4, kind: input, shape index: {}]   ;;  %s2068_s5 = inlined_call_operand.hbm [shape: f32[2,32,32], index: 5, kind: output, shape index: {}]  }
   0x1   :  { %12 = vsyncpa [#allocation3 + $0x1], 0  ;;  %s1524_s18 = smov 0   ;;  %s1526_s19 = smov 0  }
   0x2   :  { %s1528_s20 = smov 0   ;;  %s1530_s21 = smov 0  }
   0x3 LB: > { %s1545_s22 = sadd.s32 4294967295, %s1490_s21   ;;  %s1194_s23 = sadd.s32 4294967294, %s1490_s21   ;;  %s1490_s21 = sphi %s1530_s21, %s2074_s21   ;;  %s1486_s20 = sphi %s1528_s20, %s2073_s20   ;;  %s1482_s19 = sphi %s1526_s19, %s2072_s19   ;;  %s1478_s18 = sphi %s1524_s18, %s2071_s18  }
   0x4   : > { %s1549_s24 = sadd.s32 1, %s1490_s21   ;;  %s145_s25 = sadd.s32 1, %s1486_s20 }
   0x5   : > { %s142_s26 = ssub.s32 %s1490_s21, %s1549_s24  ;;  %p155_p0 = scmp.ne.s32.totalorder %s1486_s20, %s1482_s19 }
   0x6   : > { %p143_p1 = scmp.eq.s32.totalorder %s142_s26, 0  ;;  %p156_p2 = scmp.eq.s32.totalorder %s1545_s22, 1 }
   0x7   : > { %p161_p3 = scmp.ne.s32.totalorder %s1482_s19, %s1478_s18  ;;  %p162_p4 = scmp.eq.s32.totalorder %s1194_s23, 1 }
   0x8   : > { %s1560_s27 = scalar_select %p143_p1, %s1486_s20, %s145_s25  }
   0x9   : > { %p1562_p5 = por %p156_p2, %p155_p0  ;;  %p1566_p6 = por %p162_p4, %p161_p3 }
   0xa   : > { %p1197_p7 = scmp.ge.s32.totalorder %s1490_s21, 1  ;;  %p210_p8 = scmp.lt.s32.totalorder %s1490_s21, 3 }
   0xc   : > { %p211_p9 = pnand %p1197_p7, %p210_p8 }
   0xd   : > { %p248_p10 = scmp.lt.s32.totalorder (!%p211_p9), %s1545_s22, 1  ;;  %s245_s16 = sand.u32 (!%p211_p9), 1, %s1482_s19  }
   0xe   : > { %214 = sbr.rel (%p211_p9) target bundleno = 1115 (0x45b), region = 40  ;;  %s1198_s17 = sshll.u32 (!%p211_p9), %s245_s16, 5 }
   0xf   : > { %s1309_s6 = sshll.u32 (!%p211_p9), %s1545_s22, 5  ;;  %s1448_s15 = scalar_lea.hbm (!%p211_p9), %s2068_s5, 64 }
  0x13   : > { %v266_v0 = vld [vmem:[%s2066_s3 + $0x18] sm:$0xff]  ;;  %v265_v1 = vld [vmem:[%s2066_s3 + $0x10] sm:$0xff]  ;;  %v264_v3 = vld [vmem:[%s2066_s3 + $0x8] sm:$0xff]  ;;  %s249_s13 = scalar_select %p248_p10, %s1545_s22, 1  ;;  %vm308_vm0 = vcmask 261120  }
  0x14   : > { %1310 = vmatpush.msra.mxu2 %v266_v0  ;;  %v270_v2 = vld [vmem:[%s2066_s3 + $0x38] sm:$0xff]  ;;  %333 = vmatpush.msra.mxu0 %v266_v0  ;;  %v269_v4 = vld [vmem:[%s2066_s3 + $0x30] sm:$0xff]  ;;  %v263_v5 = vld [vmem:[%s2066_s3] sm:$0xff]  ;;  %s1093_s22 = scalar_lea.sflag [#allocation3], %s245_s16 }
  0x15   : > { %426 = vmatpush.msra.mxu1 %v270_v2  ;;  %1311 = vmatpush.msra.mxu3 %v266_v0  ;;  %s1592_s23 = sshll.u32 %s249_s13, 5  ;;  %v268_v6 = vld [vmem:[%s2066_s3 + $0x28] sm:$0xff]  ;;  %v267_v8 = vld [vmem:[%s2066_s3 + $0x20] sm:$0xff]  ;;  %v274_v30 = vld [vmem:[%s2066_s3 + $0x58] sm:$0xff] }
  0x16   : > { %1312 = vmatpush.msra.mxu2 %v265_v1  ;;  %334 = vmatpush.msra.mxu0 %v265_v1  ;;  %s1598_s30 = scalar_lea.vmem %s2063_s0, %s1592_s23  ;;  %s257_s10 = scalar_lea.vmem %s2064_s1, %s1592_s23  ;;  %v273_v31 = vld [vmem:[%s2066_s3 + $0x50] sm:$0xff]  ;;  %v272_v33 = vld [vmem:[%s2066_s3 + $0x48] sm:$0xff]  ;;  %v271_v34 = vld [vmem:[%s2066_s3 + $0x40] sm:$0xff] }
  0x17   : > { %427 = vmatpush.msra.mxu1 %v269_v4  ;;  %1313 = vmatpush.msra.mxu3 %v265_v1  ;;  %v297_v7 = vld [vmem:[%s1598_s30 + $0x8] sm:$0xff]  ;;  %v300_v9 = vld [vmem:[%s257_s10] sm:$0xff]  ;;  %v302_v11 = vld [vmem:[%s257_s10 + $0x10] sm:$0xff]  ;;  %s262_s26 = scalar_lea.vmem %s2065_s2, %s1592_s23  ;;  %s1104_s23 = scalar_lea.hbm %s2068_s5, %s1309_s6 }
  0x18   : > { %1314 = vmatpush.msra.mxu2 %v264_v3  ;;  %335 = vmatpush.msra.mxu0 %v264_v3  ;;  %v301_v10 = vld [vmem:[%s257_s10 + $0x8] sm:$0xff]  ;;  %v303_v12 = vld [vmem:[%s257_s10 + $0x18] sm:$0xff]  ;;  %v296_v13 = vld [vmem:[%s1598_s30] sm:$0xff]  ;;  %s1107_s10 = sshll.u32 %s1104_s23, 4  ;;  %s1108_s10 = int_to_ptr.hbm [resolvable:$true] %s1107_s10 }
  0x19   : > { %428 = vmatpush.msra.mxu1 %v268_v6  ;;  %1315 = vmatpush.msra.mxu3 %v264_v3  ;;  %v298_v14 = vld [vmem:[%s1598_s30 + $0x10] sm:$0xff]  ;;  %v299_v15 = vld [vmem:[%s1598_s30 + $0x18] sm:$0xff]  ;;  %v304_v35 = vld [vmem:[%s262_s26] sm:$0xff]  ;;  %s247_s30 = scalar_lea.vmem [#allocation2], %s1198_s17  ;;  %s1442_s11 = sshra.s32 %s1108_s10, 4  ;;  %s1443_s11 = int_to_ptr.hbm [resolvable:$true] %s1442_s11 }
  0x1a   : > { %1316 = vmatpush.msra.mxu2 %v263_v5  ;;  %336 = vmatpush.msra.mxu0 %v263_v5  ;;  %v305_v37 = vld [vmem:[%s262_s26 + $0x8] sm:$0xff]  ;;  %v306_v39 = vld [vmem:[%s262_s26 + $0x10] sm:$0xff]  ;;  %v307_v40 = vld [vmem:[%s262_s26 + $0x18] sm:$0xff]  ;;  %s1105_s9 = sshll.u32 %s247_s30, 4  ;;  %s1444_s12 = scalar_lea.hbm %s1443_s11, 32  ;;  %s1106_s9 = int_to_ptr.vmem [resolvable:$true] %s1105_s9 }
  0x1b   : > { %1214 = vmatmul.msk.f32.vlgmr.msra.gmra.mxu2 %vm308_vm0, %v297_v7  ;;  %429 = vmatpush.msra.mxu1 %v267_v8  ;;  %v1688_v43 = vld [vmem:[%s2066_s3 + $0x88] sm:$0xff]  ;;  %v1697_v46 = vld [vmem:[%s2066_s3 + $0x90] sm:$0xff]  ;;  %v1705_v49 = vld [vmem:[%s2066_s3 + $0x98] sm:$0xff]  ;;  %p1445_p11 = scmp.ne.s32.totalorder %s1443_s11, %s1444_s12  ;;  %p1449_p0 = scmp.lt.s32.totalorder %s1443_s11, %s2068_s5 }
  0x1c   : > { %1318 = vmatpush.msrb.mxu2 %v270_v2  ;;  %1221 = vmatmul.msk.f32.vlgmr.msra.gmra.mxu1 %vm308_vm0, %v300_v9  ;;  %v1713_v51 = vld [vmem:[%s2066_s3 + $0xa0] sm:$0xff]  ;;  %v1721_v54 = vld [vmem:[%s2066_s3 + $0xa8] sm:$0xff]  ;;  %v1729_v57 = vld [vmem:[%s2066_s3 + $0xb0] sm:$0xff]  ;;  %p1450_p1 = scmp.lt.s32.totalorder %s1448_s15, %s1444_s12 }
  0x1d   : > { %1317 = vmatpush.msra.mxu3 %v263_v5  ;;  %1205 = vmatmul.msk.f32.vlgmr.msra.gmra.mxu0 %vm308_vm0, %v296_v13  ;;  %v1737_v60 = vld [vmem:[%s2066_s3 + $0xb8] sm:$0xff]  ;;  %v1745_v63 = vld [vmem:[%s2066_s3 + $0xc0] sm:$0xff]  ;;  %v1753_v1 = vld [vmem:[%s2066_s3 + $0xc8] sm:$0xff]  ;;  %p1446_p12 = pnand %p1445_p11, %p1562_p5 }
  0x1e   : > { %1319 = vmatpush.msrb.mxu2 %v269_v4  ;;  %1215 = vmatmul.msk.f32.vlgmr.msra.gmra.mxu3 %vm308_vm0, %v298_v14  ;;  %v1761_v5 = vld [vmem:[%s2066_s3 + $0xd0] sm:$0xff]  ;;  %p1451_p2 = por %p1450_p1, %p1449_p0 }
  0x1f   : > { %p1447_p13 = pneg %p1446_p12 }
  0x20   : > { %1320 = vmatpush.msrb.mxu2 %v268_v6 }
  0x21   : > { %p1452_p3 = pnand %p1451_p2, %p1447_p13 }
  0x22   : > { %1321 = vmatpush.msrb.mxu2 %v267_v8 }
  0x23   : > { %1230 = vmatmul.msk.f32.vlgmr.msrb.gmra.mxu2 %vm308_vm0, %v301_v10 }
  0x24   : > { %1222 = vmatmul.msk.f32.gmra.mxu1 %vm308_vm0, %v301_v10  ;;  %503 = vmatpush.msra.mxu2 %v274_v30 }
  0x25   : > { %1206 = vmatmul.msk.f32.gmra.mxu0 %vm308_vm0, %v297_v7 }
  0x26   : > { %1216 = vmatmul.msk.f32.gmra.mxu3 %vm308_vm0, %v299_v15  ;;  %504 = vmatpush.msra.mxu2 %v273_v31  ;;  %v572_v31 = vld [vmem:[%s2067_s4] sm:$0xff] }
  0x28   : > { %505 = vmatpush.msra.mxu2 %v272_v33 }
  0x2a   : > { %506 = vmatpush.msra.mxu2 %v271_v34 }
  0x2b   : > { %1231 = vmatmul.msk.f32.gmra.mxu2 %vm308_vm0, %v302_v11 }
  0x2c   : > { %1223 = vmatmul.msk.f32.gmra.mxu1 %vm308_vm0, %v302_v11 }
  0x2d   : > { %1207 = vmatmul.msk.f32.gmra.mxu0 %vm308_vm0, %v298_v14 }
  0x2e   : > { %1217 = vmatmul.msk.f32.gmra.mxu3 %vm308_vm0, %v296_v13 }
  0x33   : > { %1232 = vmatmul.msk.f32.gmra.mxu2 %vm308_vm0, %v303_v12 }
  0x34   : > { %1224 = vmatmul.msk.f32.gmra.mxu1 %vm308_vm0, %v303_v12 }
  0x35   : > { %1208 = vmatmul.msk.f32.gmra.mxu0 %vm308_vm0, %v299_v15 }
  0x36   : > { %1218 = vmatmul.msk.f32.gmra.mxu3 %vm308_vm0, %v297_v7 }
  0x3b   : > { %1233 = vmatmul.msk.f32.gmra.mxu2 %vm308_vm0, %v300_v9 }
  0x3c   : > { %1225 = vmatmul.msk.f32.gmra.mxu1 %vm308_vm0, %v300_v9 }
  0x3d   : > { %1209 = vmatmul.msk.f32.gmra.mxu0 %vm308_vm0, %v296_v13 }
  0x3e   : > { %1219 = vmatmul.msk.f32.gmra.mxu3 %vm308_vm0, %v298_v14 }
  0x43   : > { %1234 = vmatmul.msk.f32.gmra.mxu2 %vm308_vm0, %v301_v10 }
  0x44   : > { %1226 = vmatmul.msk.f32.gmra.mxu1 %vm308_vm0, %v301_v10 }
  0x45   : > { %1210 = vmatmul.msk.f32.gmra.mxu0 %vm308_vm0, %v297_v7  ;;  %v1770_v7 = vld [vmem:[%s2066_s3 + $0xd8] sm:$0xff] }
  0x46   : > { %1220 = vmatmul.msk.f32.gmra.mxu3 %vm308_vm0, %v299_v15 }
  0x4b   : > { %1235 = vmatmul.msk.f32.gmra.mxu2 %vm308_vm0, %v302_v11 }
  0x4c   : > { %1227 = vmatmul.msk.f32.gmra.mxu1 %vm308_vm0, %v302_v11  ;;  %v1779_v11 = vld [vmem:[%s2066_s3 + $0xe0] sm:$0xff] }
  0x4d   : > { %1211 = vmatmul.msk.f32.gmra.mxu0 %vm308_vm0, %v298_v14 }
  0x53   : > { %1236 = vmatmul.msk.f32.gmra.mxu2 %vm308_vm0, %v303_v12 }
  0x54   : > { %1228 = vmatmul.msk.f32.gmra.mxu1 %vm308_vm0, %v303_v12 }
  0x55   : > { %1212 = vmatmul.msk.f32.gmra.mxu0 %vm308_vm0, %v299_v15  ;;  %v1788_v15 = vld [vmem:[%s2066_s3 + $0xe8] sm:$0xff] }
  0x5b   : > { %1237 = vmatmul.msk.f32.vlgmr.msra.gmra.mxu2 %vm308_vm0, %v304_v35 }
  0x5c   : > { %1229 = vmatmul.msk.f32.gmra.mxu1 %vm308_vm0, %v300_v9 }
  0x5d   : > { %1213 = vmatmul.msk.f32.gmra.mxu0 %vm308_vm0, %v296_v13 }
  0x63   : > { %1238 = vmatmul.msk.f32.gmra.mxu2 %vm308_vm0, %v305_v37 }
  0x6b   : > { %1239 = vmatmul.msk.f32.gmra.mxu2 %vm308_vm0, %v306_v39 }
  0x73   : > { %1240 = vmatmul.msk.f32.gmra.mxu2 %vm308_vm0, %v307_v40 }
  0x7b   : > { %1241 = vmatmul.msk.f32.gmra.mxu2 %vm308_vm0, %v304_v35 }
  0x83   : > { %1242 = vmatmul.msk.f32.gmra.mxu2 %vm308_vm0, %v305_v37 }
  0x8b   : > { %1243 = vmatmul.msk.f32.gmra.mxu2 %vm308_vm0, %v306_v39 }
  0x93   : > { %1244 = vmatmul.msk.f32.gmra.mxu2 %vm308_vm0, %v307_v40 }
  0x99   : > { %v431_v17 = vpop.f32.mrf.mxu1 }
  0x9a   : > { %v338_v41 = vpop.f32.mrf.mxu0 }
  0x9b   : > { %v386_v44 = vmul.f32 %v338_v41, %v1688_v43  ;;  %1245 = vmatmul.msk.f32.gmra.mxu2 %vm308_vm0, %v304_v35 }
  0x9e   : > { %v1641_v16 = vpop.f32.mrf.mxu2 }
  0x9f   : > { %v395_v6 = vmul.f32 %v1641_v16, %v1761_v5 }
  0xa1   : > { %v434_v19 = vpop.f32.mrf.mxu1  ;;  %v368_v4 = vpop.f32.mrf.mxu3 }
  0xa2   : > { %v341_v42 = vpop.f32.mrf.mxu0  ;;  %v396_v9 = vmul.f32 %v368_v4, %v1770_v7  ;;  %v579_v4 = vld [vmem:[%s2067_s4 + $0x38] sm:$0xff] }
  0xa3   : > { %v387_v47 = vmul.f32 %v341_v42, %v1697_v46  ;;  %1246 = vmatmul.msk.f32.gmra.mxu2 %vm308_vm0, %v305_v37 }
  0xa6   : > { %v458_v18 = vpop.f32.mrf.mxu2 }
  0xa9   : > { %v437_v21 = vpop.f32.mrf.mxu1  ;;  %v371_v8 = vpop.f32.mrf.mxu3 }
  0xaa   : > { %v344_v45 = vpop.f32.mrf.mxu0  ;;  %v397_v13 = vmul.f32 %v371_v8, %v1779_v11 }
  0xab   : > { %v388_v50 = vmul.f32 %v344_v45, %v1705_v49  ;;  %1247 = vmatmul.msk.f32.gmra.mxu2 %vm308_vm0, %v306_v39 }
  0xae   : > { %v461_v20 = vpop.f32.mrf.mxu2 }
  0xb1   : > { %v440_v24 = vpop.f32.mrf.mxu1  ;;  %v374_v12 = vpop.f32.mrf.mxu3 }
  0xb2   : > { %v347_v48 = vpop.f32.mrf.mxu0  ;;  %v398_v16 = vmul.f32 %v374_v12, %v1788_v15 }
  0xb3   : > { %v389_v53 = vmul.f32 %v347_v48, %v1713_v51  ;;  %1248 = vmatmul.msk.f32.gmra.mxu2 %vm308_vm0, %v307_v40 }
  0xb6   : > { %v464_v22 = vpop.f32.mrf.mxu2 }
  0xb9   : > { %v443_v26 = vpop.f32.mrf.mxu1 }
  0xba   : > { %v350_v52 = vpop.f32.mrf.mxu0 }
  0xbb   : > { %v390_v56 = vmul.f32 %v350_v52, %v1721_v54  ;;  %1249 = vmatmul.msk.f32.gmra.mxu2 %vm308_vm0, %v304_v35  ;;  %v573_v35 = vld [vmem:[%s2067_s4 + $0x8] sm:$0xff] }
  0xbe   : > { %v467_v23 = vpop.f32.mrf.mxu2 }
  0xc1   : > { %v446_v28 = vpop.f32.mrf.mxu1 }
  0xc2   : > { %v353_v55 = vpop.f32.mrf.mxu0 }
  0xc3   : > { %v391_v58 = vmul.f32 %v353_v55, %v1729_v57  ;;  %1250 = vmatmul.msk.f32.gmra.mxu2 %vm308_vm0, %v305_v37 }
  0xc6   : > { %v470_v25 = vpop.f32.mrf.mxu2 }
  0xc9   : > { %v449_v32 = vpop.f32.mrf.mxu1 }
  0xca   : > { %v356_v59 = vpop.f32.mrf.mxu0 }
  0xcb   : > { %v392_v61 = vmul.f32 %v356_v59, %v1737_v60  ;;  %1251 = vmatmul.msk.f32.gmra.mxu2 %vm308_vm0, %v306_v39  ;;  %v574_v39 = vld [vmem:[%s2067_s4 + $0x10] sm:$0xff] }
  0xce   : > { %v473_v27 = vpop.f32.mrf.mxu2 }
  0xd1   : > { %v452_v36 = vpop.f32.mrf.mxu1 }
  0xd2   : > { %v359_v62 = vpop.f32.mrf.mxu0 }
  0xd3   : > { %v393_v0 = vmul.f32 %v359_v62, %v1745_v63  ;;  %1252 = vmatmul.msk.f32.gmra.mxu2 %vm308_vm0, %v307_v40  ;;  %v578_v62 = vld [vmem:[%s2067_s4 + $0x30] sm:$0xff] }
  0xd6   : > { %v476_v29 = vpop.f32.mrf.mxu2 }
  0xd7   : > { %1253 = vmatpush.xpose.msk.msrb.mxu3 %vm308_vm0, %v476_v29 }
  0xd9   : > { %v455_v38 = vpop.f32.mrf.mxu1 }
  0xda   : > { %v362_v2 = vpop.f32.mrf.mxu0 }
  0xdb   : > { %1254 = vmatpush.xpose.msk.msrb.mxu3 %vm308_vm0, %v473_v27  ;;  %v394_v3 = vmul.f32 %v362_v2, %v1753_v1 }
  0xde   : > { %v1774_v10 = vpop.f32.mrf.mxu2 }
  0xdf   : > { %1255 = vmatpush.xpose.msk.msrb.mxu3 %vm308_vm0, %v470_v25 }
  0xe3   : > { %1256 = vmatpush.xpose.msk.msrb.mxu3 %vm308_vm0, %v467_v23  ;;  %v294_v23 = vld [vmem:[%s2066_s3 + $0xf8] sm:$0xff] }
  0xe6   : > { %v1783_v14 = vpop.f32.mrf.mxu2 }
  0xe7   : > { %1257 = vmatpush.xpose.msk.msrb.mxu3 %vm308_vm0, %v464_v22 }
  0xeb   : > { %1258 = vmatpush.xpose.msk.msrb.mxu3 %vm308_vm0, %v461_v20 }
  0xef   : > { %1259 = vmatpush.xpose.msk.msrb.mxu3 %vm308_vm0, %v458_v18  ;;  %v1792_v18 = vpop.f32.mrf.mxu2 }
  0xf3   : > { %1260 = vmatpush.xpose.msk.msrb.mxu3 %vm308_vm0, %v455_v38 }
  0xf7   : > { %1261 = vmatpush.xpose.msk.msrb.mxu3 %vm308_vm0, %v452_v36  ;;  %v1798_v22 = vpop.f32.mrf.mxu2 }
  0xfb   : > { %1262 = vmatpush.xpose.msk.msrb.mxu3 %vm308_vm0, %v449_v32 }
  0xff   : > { %1263 = vmatpush.xpose.msk.msrb.mxu3 %vm308_vm0, %v446_v28  ;;  %v1804_v25 = vpop.f32.mrf.mxu2 }
 0x103   : > { %1264 = vmatpush.xpose.msk.msrb.mxu3 %vm308_vm0, %v443_v26  ;;  %v295_v26 = vld [vmem:[%s2066_s3 + $0x100] sm:$0xff] }
 0x107   : > { %1265 = vmatpush.xpose.msk.msrb.mxu3 %vm308_vm0, %v440_v24  ;;  %v523_v29 = vpop.f32.mrf.mxu2 }
 0x10b   : > { %1266 = vmatpush.xpose.msk.msrb.mxu3 %vm308_vm0, %v437_v21 }
 0x10f   : > { %1267 = vmatpush.xpose.msk.msrb.mxu3 %vm308_vm0, %v434_v19  ;;  %v293_v19 = vld [vmem:[%s2066_s3 + $0xf0] sm:$0xff]  ;;  %v526_v30 = vpop.f32.mrf.mxu2 }
 0x113   : > { %1268 = vmatpush.xpose.msk.msrb.mxu3 %vm308_vm0, %v431_v17  ;;  %v377_v17 = vpop.f32.mrf.mxu3 }
 0x114   : > { %v399_v20 = vmul.f32 %v377_v17, %v293_v19 }
 0x116   : > { %1269 = vmatmul.msk.f32.vlgmr.msrb.gmra.mxu3 %vm308_vm0, %v386_v44  ;;  %v575_v44 = vld [vmem:[%s2067_s4 + $0x18] sm:$0xff] }
 0x117   : > { %v529_v34 = vpop.f32.mrf.mxu2 }
 0x11b   : > { %v380_v21 = vpop.f32.mrf.mxu3 }
 0x11c   : > { %v400_v24 = vmul.f32 %v380_v21, %v294_v23 }
 0x11e   : > { %1270 = vmatmul.msk.f32.gmra.mxu3 %vm308_vm0, %v387_v47 }
 0x11f   : > { %v532_v38 = vpop.f32.mrf.mxu2 }
 0x123   : > { %v383_v27 = vpop.f32.mrf.mxu3 }
 0x124   : > { %v401_v28 = vmul.f32 %v383_v27, %v295_v26 }
 0x126   : > { %1271 = vmatmul.msk.f32.gmra.mxu3 %vm308_vm0, %v388_v50  ;;  %v576_v50 = vld [vmem:[%s2067_s4 + $0x20] sm:$0xff] }
 0x127   : > { %v535_v42 = vpop.f32.mrf.mxu2 }
 0x128   : > { %v565_v27 = vmul.f32 %v535_v42, %v1761_v5  ;;  %v559_v5 = vmul.f32 %v1798_v22, %v1713_v51 }
 0x12e   : > { %1272 = vmatmul.msk.f32.gmra.mxu3 %vm308_vm0, %v389_v53 }
 0x12f   : > { %v538_v48 = vpop.f32.mrf.mxu2 }
 0x136   : > { %1273 = vmatmul.msk.f32.gmra.mxu3 %vm308_vm0, %v390_v56  ;;  %v577_v56 = vld [vmem:[%s2067_s4 + $0x28] sm:$0xff] }
 0x137   : > { %v541_v55 = vpop.f32.mrf.mxu2 }
 0x138   : > { %v567_v21 = vmul.f32 %v541_v55, %v1779_v11  ;;  %v560_v11 = vmul.f32 %v1804_v25, %v1721_v54 }
 0x13e   : > { %1274 = vmatmul.msk.f32.gmra.mxu3 %vm308_vm0, %v391_v58 }
 0x146   : > { %1275 = vmatmul.msk.f32.gmra.mxu3 %vm308_vm0, %v392_v61  ;;  %v544_v61 = vpop.f32.mrf.mxu2 }
 0x14e   : > { %1276 = vmatmul.msk.f32.gmra.mxu3 %vm308_vm0, %v393_v0 }
 0x156   : > { %1277 = vmatmul.msk.f32.gmra.mxu3 %vm308_vm0, %v394_v3  ;;  %v547_v3 = vpop.f32.mrf.mxu2 }
 0x157   : > { %v569_v17 = vmul.f32 %v547_v3, %v293_v19  ;;  %v562_v19 = vmul.f32 %v526_v30, %v1737_v60 }
 0x15e   : > { %1278 = vmatmul.msk.f32.gmra.mxu3 %vm308_vm0, %v395_v6 }
 0x166   : > { %1279 = vmatmul.msk.f32.gmra.mxu3 %vm308_vm0, %v396_v9  ;;  %v550_v9 = vpop.f32.mrf.mxu2 }
 0x16e   : > { %1280 = vmatmul.msk.f32.gmra.mxu3 %vm308_vm0, %v397_v13  ;;  %v553_v12 = vpop.f32.mrf.mxu2  ;;  %v570_v13 = vmul.f32 %v550_v9, %v294_v23  ;;  %v563_v23 = vmul.f32 %v529_v34, %v1745_v63  ;;  %v557_v63 = vmul.f32 %v1783_v14, %v1697_v46 }
 0x176   : > { %1281 = vmatmul.msk.f32.gmra.mxu3 %vm308_vm0, %v398_v16  ;;  %v571_v16 = vmul.f32 %v553_v12, %v295_v26 }
 0x178   : > { %893 = vmatpush.msrb.mxu0 %v571_v16 }
 0x17a   : > { %894 = vmatpush.msrb.mxu0 %v570_v13 }
 0x17c   : > { %895 = vmatpush.msrb.mxu0 %v569_v17 }
 0x17e   : > { %1282 = vmatmul.msk.f32.gmra.mxu3 %vm308_vm0, %v399_v20  ;;  %v568_v20 = vmul.f32 %v544_v61, %v1788_v15  ;;  %v561_v15 = vmul.f32 %v523_v29, %v1729_v57  ;;  %v556_v57 = vmul.f32 %v1774_v10, %v1688_v43  ;;  %v580_v43 = vld [vmem:[%s2067_s4 + $0x40] sm:$0xff] }
 0x180   : > { %896 = vmatpush.msrb.mxu0 %v568_v20  ;;  %v586_v20 = vld [vmem:[%s2067_s4 + $0x70] sm:$0xff] }
 0x182   : > { %897 = vmatpush.msrb.mxu0 %v567_v21 }
 0x186   : > { %1283 = vmatmul.msk.f32.gmra.mxu3 %vm308_vm0, %v400_v24  ;;  %v566_v24 = vmul.f32 %v538_v48, %v1770_v7 }
 0x188   : > { %898 = vmatpush.msrb.mxu0 %v566_v24 }
 0x18a   : > { %899 = vmatpush.msrb.mxu0 %v565_v27 }
 0x18e   : > { %1284 = vmatmul.msk.f32.gmra.mxu3 %vm308_vm0, %v401_v28  ;;  %v564_v28 = vmul.f32 %v532_v38, %v1753_v1  ;;  %v558_v1 = vmul.f32 %v1792_v18, %v1705_v49  ;;  %v582_v38 = vld [vmem:[%s2067_s4 + $0x50] sm:$0xff] }
 0x190   : > { %900 = vmatpush.msrb.mxu0 %v564_v28 }
 0x192   : > { %901 = vmatpush.msrb.mxu0 %v563_v23 }
 0x194   : > { %902 = vmatpush.msrb.mxu0 %v562_v19 }
 0x196   : > { %903 = vmatpush.msrb.mxu0 %v561_v15 }
 0x198   : > { %904 = vmatpush.msrb.mxu0 %v560_v11 }
 0x199   : > { %v701_v32 = vpop.f32.mrf.mxu3 }
 0x19a   : > { %v1813_v33 = vadd.f32 %v701_v32, %v572_v31  ;;  %905 = vmatpush.msrb.mxu0 %v559_v5  ;;  %v581_v32 = vld [vmem:[%s2067_s4 + $0x48] sm:$0xff] }
 0x19c   : > { %749 = vmax.xlane.f32.xlu0 %v1813_v33  ;;  %906 = vmatpush.msrb.mxu0 %v558_v1 }
 0x19e   : > { %907 = vmatpush.msrb.mxu0 %v557_v63 }
 0x1a0   : > { %908 = vmatpush.msrb.mxu0 %v556_v57 }
 0x1a1   : > { %v704_v36 = vpop.f32.mrf.mxu3 }
 0x1a2   : > { %v1819_v37 = vadd.f32 %v704_v36, %v573_v35 }
 0x1a4   : > { %751 = vmax.xlane.f32.xlu0 %v1819_v37 }
 0x1a9   : > { %v707_v40 = vpop.f32.mrf.mxu3 }
 0x1aa   : > { %v1825_v41 = vadd.f32 %v707_v40, %v574_v39 }
 0x1ac   : > { %753 = vmax.xlane.f32.xlu1 %v1825_v41 }
 0x1b1   : > { %v710_v45 = vpop.f32.mrf.mxu3 }
 0x1b2   : > { %v1831_v47 = vadd.f32 %v710_v45, %v575_v44 }
 0x1b4   : > { %755 = vmax.xlane.f32.xlu1 %v1831_v47 }
 0x1b9   : > { %v713_v52 = vpop.f32.mrf.mxu3 }
 0x1ba   : > { %v1837_v53 = vadd.f32 %v713_v52, %v576_v50 }
 0x1bc   : > { %757 = vmax.xlane.f32.xlu2 %v1837_v53 }
 0x1c1   : > { %v716_v58 = vpop.f32.mrf.mxu3 }
 0x1c2   : > { %v1843_v59 = vadd.f32 %v716_v58, %v577_v56  ;;  %v584_v58 = vld [vmem:[%s2067_s4 + $0x60] sm:$0xff] }
 0x1c4   : > { %759 = vmax.xlane.f32.xlu2 %v1843_v59 }
 0x1c9   : > { %v719_v0 = vpop.f32.mrf.mxu3 }
 0x1ca   : > { %v1849_v2 = vadd.f32 %v719_v0, %v578_v62 }
 0x1cc   : > { %761 = vmax.xlane.f32.xlu0 %v1849_v2 }
 0x1d1   : > { %v722_v6 = vpop.f32.mrf.mxu3 }
 0x1d2   : > { %v1855_v8 = vadd.f32 %v722_v6, %v579_v4  ;;  %v585_v6 = vld [vmem:[%s2067_s4 + $0x68] sm:$0xff] }
 0x1d4   : > { %763 = vmax.xlane.f32.xlu2 %v1855_v8 }
 0x1d9   : > { %v725_v7 = vpop.f32.mrf.mxu3 }
 0x1da   : > { %v1884_v10 = vadd.f32 %v725_v7, %v580_v43 }
 0x1e1   : > { %v728_v46 = vpop.f32.mrf.mxu3 }
 0x1e2   : > { %v1895_v35 = vadd.f32 %v728_v46, %v581_v32 }
 0x1e9   : > { %v731_v31 = vpop.f32.mrf.mxu3 }
 0x1ea   : > { %v1905_v42 = vadd.f32 %v731_v31, %v582_v38 }
 0x1f1   : > { %v734_v39 = vpop.f32.mrf.mxu3 }
 0x1f9   : > { %v737_v50 = vpop.f32.mrf.mxu3 }
 0x1fa   : > { %v1925_v0 = vadd.f32 %v737_v50, %v584_v58 }
 0x201   : > { %v740_v3 = vpop.f32.mrf.mxu3 }
 0x202   : > { %v1935_v13 = vadd.f32 %v740_v3, %v585_v6 }
 0x209   : > { %v743_v17 = vpop.f32.mrf.mxu3 }
 0x20a   : > { %v1944_v21 = vadd.f32 %v743_v17, %v586_v20 }
 0x20f   : > { %v750_v54 = vpop.xlane.xlu0 %749 }
 0x210   : > { %v781_v60 = vsub.f32 %v1813_v33, %v750_v54 }
 0x211   : > { %v746_v27 = vpop.f32.mrf.mxu3 }
 0x212   : > { %v797_v51 = vmul.f32 1.442695, %v781_v60 }
 0x214   : > { %1364 = vpow2.f32 %v797_v51 }
 0x217   : > { %v752_v22 = vpop.xlane.xlu0 %751 }
 0x218   : > { %v782_v49 = vsub.f32 %v1819_v37, %v752_v22 }
 0x21a   : > { %v1878_v18 = vpop.eup %1364  ;;  %v799_v25 = vmul.f32 1.442695, %v782_v49 }
 0x21b   : > { %829 = vadd.xlane.f32.xlu1 %v1878_v18 }
 0x21c   : > { %1366 = vpow2.f32 %v799_v25 }
 0x21f   : > { %v754_v14 = vpop.xlane.xlu1 %753 }
 0x220   : > { %v783_v26 = vsub.f32 %v1825_v41, %v754_v14 }
 0x222   : > { %v1887_v29 = vpop.eup %1366  ;;  %v801_v30 = vmul.f32 1.442695, %v783_v26 }
 0x223   : > { %831 = vadd.xlane.f32.xlu0 %v1887_v29  ;;  %765 = vmax.xlane.f32.xlu1 %v1884_v10 }
 0x224   : > { %1368 = vpow2.f32 %v801_v30 }
 0x227   : > { %v756_v33 = vpop.xlane.xlu1 %755 }
 0x228   : > { %v784_v34 = vsub.f32 %v1831_v47, %v756_v33  ;;  %v583_v47 = vld [vmem:[%s2067_s4 + $0x58] sm:$0xff] }
 0x229   : > { %v1915_v55 = vadd.f32 %v734_v39, %v583_v47  ;;  %v276_v47 = vld [vmem:[%s2066_s3 + $0x68] sm:$0xff] }
 0x22a   : > { %v1897_v36 = vpop.eup %1368  ;;  %v803_v37 = vmul.f32 1.442695, %v784_v34 }
 0x22b   : > { %833 = vadd.xlane.f32.xlu2 %v1897_v36  ;;  %767 = vmax.xlane.f32.xlu0 %v1895_v35 }
 0x22c   : > { %1370 = vpow2.f32 %v803_v37 }
 0x22f   : > { %v758_v40 = vpop.xlane.xlu2 %757 }
 0x230   : > { %v785_v41 = vsub.f32 %v1837_v53, %v758_v40 }
 0x232   : > { %v1907_v44 = vpop.eup %1370  ;;  %v805_v45 = vmul.f32 1.442695, %v785_v41 }
 0x233   : > { %769 = vmax.xlane.f32.xlu2 %v1905_v42  ;;  %835 = vadd.xlane.f32.xlu1 %v1907_v44 }
 0x234   : > { %1372 = vpow2.f32 %v805_v45  ;;  %v277_v45 = vld [vmem:[%s2066_s3 + $0x70] sm:$0xff] }
 0x237   : > { %v760_v48 = vpop.xlane.xlu2 %759 }
 0x238   : > { %v786_v52 = vsub.f32 %v1843_v59, %v760_v48 }
 0x23a   : > { %v1917_v53 = vpop.eup %1372  ;;  %v807_v56 = vmul.f32 1.442695, %v786_v52 }
 0x23b   : > { %837 = vadd.xlane.f32.xlu0 %v1917_v53  ;;  %771 = vmax.xlane.f32.xlu1 %v1915_v55 }
 0x23c   : > { %1374 = vpow2.f32 %v807_v56 }
 0x23f   : > { %v762_v61 = vpop.xlane.xlu0 %761 }
 0x240   : > { %v787_v62 = vsub.f32 %v1849_v2, %v762_v61 }
 0x242   : > { %v1927_v59 = vpop.eup %1374  ;;  %v809_v4 = vmul.f32 1.442695, %v787_v62 }
 0x243   : > { %839 = vadd.xlane.f32.xlu2 %v1927_v59  ;;  %773 = vmax.xlane.f32.xlu0 %v1925_v0 }
 0x244   : > { %1376 = vpow2.f32 %v809_v4 }
 0x247   : > { %v764_v9 = vpop.xlane.xlu2 %763 }
 0x248   : > { %v788_v12 = vsub.f32 %v1855_v8, %v764_v9  ;;  %v587_v8 = vld [vmem:[%s2067_s4 + $0x78] sm:$0xff] }
 0x249   : > { %v1953_v28 = vadd.f32 %v746_v27, %v587_v8 }
 0x24a   : > { %v1937_v2 = vpop.eup %1376  ;;  %v811_v16 = vmul.f32 1.442695, %v788_v12 }
 0x24b   : > { %775 = vmax.xlane.f32.xlu2 %v1935_v13  ;;  %841 = vadd.xlane.f32.xlu1 %v1937_v2 }
 0x24c   : > { %1378 = vpow2.f32 %v811_v16 }
 0x252   : > { %v1946_v24 = vpop.eup %1378 }
 0x253   : > { %843 = vadd.xlane.f32.xlu0 %v1946_v24  ;;  %777 = vmax.xlane.f32.xlu1 %v1944_v21 }
 0x25b   : > { %779 = vmax.xlane.f32.xlu0 %v1953_v28 }
 0x28e   : > { %v830_v23 = vpop.xlane.xlu1 %829 }
 0x28f   : > { %1380 = vrcp.f32 %v830_v23 }
 0x295   : > { %v1381_v19 = vpop.eup %1380 }
 0x296   : > { %v832_v15 = vpop.xlane.xlu0 %831  ;;  %v766_v11 = vpop.xlane.xlu1 %765  ;;  %v877_v5 = vmul.f32 %v1381_v19, %v1878_v18 }
 0x297   : > { %1382 = vrcp.f32 %v832_v15  ;;  %v789_v1 = vsub.f32 %v1884_v10, %v766_v11 }
 0x298   : > { %909 = vmatmul.f32.vlgmr.msrb.gmra.mxu0 %v877_v5 }
 0x299   : > { %v813_v63 = vmul.f32 1.442695, %v789_v1 }
 0x29b   : > { %1384 = vpow2.f32 %v813_v63 }
 0x29d   : > { %v1383_v57 = vpop.eup %1382 }
 0x29e   : > { %v834_v54 = vpop.xlane.xlu2 %833  ;;  %v768_v60 = vpop.xlane.xlu0 %767  ;;  %v878_v7 = vmul.f32 %v1383_v57, %v1887_v29 }
 0x29f   : > { %1386 = vrcp.f32 %v834_v54  ;;  %v790_v51 = vsub.f32 %v1895_v35, %v768_v60 }
 0x2a0   : > { %912 = vmatmul.f32.gmra.mxu0 %v878_v7 }
 0x2a1   : > { %v1960_v22 = vpop.eup %1384  ;;  %v815_v49 = vmul.f32 1.442695, %v790_v51 }
 0x2a2   : > { %845 = vadd.xlane.f32.xlu2 %v1960_v22 }
 0x2a3   : > { %1388 = vpow2.f32 %v815_v49 }
 0x2a5   : > { %v1387_v18 = vpop.eup %1386 }
 0x2a6   : > { %v770_v25 = vpop.xlane.xlu2 %769  ;;  %v836_v43 = vpop.xlane.xlu1 %835  ;;  %v879_v46 = vmul.f32 %v1387_v18, %v1897_v36 }
 0x2a7   : > { %v791_v10 = vsub.f32 %v1905_v42, %v770_v25  ;;  %1390 = vrcp.f32 %v836_v43 }
 0x2a8   : > { %915 = vmatmul.f32.gmra.mxu0 %v879_v46 }
 0x2a9   : > { %v1965_v14 = vpop.eup %1388  ;;  %v817_v26 = vmul.f32 1.442695, %v791_v10 }
 0x2aa   : > { %847 = vadd.xlane.f32.xlu1 %v1965_v14 }
 0x2ab   : > { %1392 = vpow2.f32 %v817_v26 }
 0x2ad   : > { %v1391_v29 = vpop.eup %1390 }
 0x2ae   : > { %v838_v30 = vpop.xlane.xlu0 %837  ;;  %v772_v31 = vpop.xlane.xlu1 %771  ;;  %v880_v32 = vmul.f32 %v1391_v29, %v1907_v44  ;;  %v278_v44 = vld [vmem:[%s2066_s3 + $0x78] sm:$0xff] }
 0x2af   : > { %1394 = vrcp.f32 %v838_v30  ;;  %v792_v33 = vsub.f32 %v1915_v55, %v772_v31  ;;  %1018 = vmatpush.msrb.mxu1 %v278_v44 }
 0x2b0   : > { %918 = vmatmul.f32.gmra.mxu0 %v880_v32 }
 0x2b1   : > { %v1970_v34 = vpop.eup %1392  ;;  %v819_v35 = vmul.f32 1.442695, %v792_v33  ;;  %1019 = vmatpush.msrb.mxu1 %v277_v45 }
 0x2b2   : > { %849 = vadd.xlane.f32.xlu2 %v1970_v34 }
 0x2b3   : > { %1396 = vpow2.f32 %v819_v35  ;;  %1020 = vmatpush.msrb.mxu1 %v276_v47 }
 0x2b5   : > { %v1395_v36 = vpop.eup %1394 }
 0x2b6   : > { %v840_v37 = vpop.xlane.xlu2 %839  ;;  %v774_v38 = vpop.xlane.xlu0 %773  ;;  %v881_v39 = vmul.f32 %v1395_v36, %v1917_v53 }
 0x2b7   : > { %1398 = vrcp.f32 %v840_v37  ;;  %v793_v40 = vsub.f32 %v1925_v0, %v774_v38 }
 0x2b8   : > { %921 = vmatmul.f32.gmra.mxu0 %v881_v39 }
 0x2b9   : > { %v1975_v41 = vpop.eup %1396  ;;  %v821_v42 = vmul.f32 1.442695, %v793_v40 }
 0x2ba   : > { %851 = vadd.xlane.f32.xlu0 %v1975_v41 }
 0x2bb   : > { %1400 = vpow2.f32 %v821_v42 }
 0x2bd   : > { %v1399_v48 = vpop.eup %1398 }
 0x2be   : > { %v776_v50 = vpop.xlane.xlu2 %775  ;;  %v842_v52 = vpop.xlane.xlu1 %841  ;;  %v882_v55 = vmul.f32 %v1399_v48, %v1927_v59 }
 0x2bf   : > { %v794_v53 = vsub.f32 %v1935_v13, %v776_v50  ;;  %1402 = vrcp.f32 %v842_v52 }
 0x2c0   : > { %924 = vmatmul.f32.gmra.mxu0 %v882_v55 }
 0x2c1   : > { %v1989_v56 = vpop.eup %1400  ;;  %v823_v58 = vmul.f32 1.442695, %v794_v53 }
 0x2c2   : > { %853 = vadd.xlane.f32.xlu1 %v1989_v56 }
 0x2c3   : > { %1404 = vpow2.f32 %v823_v58 }
 0x2c5   : > { %v1403_v61 = vpop.eup %1402 }
 0x2c6   : > { %v844_v62 = vpop.xlane.xlu0 %843  ;;  %v778_v0 = vpop.xlane.xlu1 %777  ;;  %v883_v3 = vmul.f32 %v1403_v61, %v1937_v2 }
 0x2c7   : > { %1406 = vrcp.f32 %v844_v62  ;;  %v795_v4 = vsub.f32 %v1944_v21, %v778_v0  ;;  %v275_v21 = vld [vmem:[%s2066_s3 + $0x60] sm:$0xff] }
 0x2c8   : > { %927 = vmatmul.f32.gmra.mxu0 %v883_v3  ;;  %1021 = vmatpush.msrb.mxu1 %v275_v21 }
 0x2c9   : > { %v1405_v59 = vpop.eup %1404  ;;  %v825_v6 = vmul.f32 1.442695, %v795_v4 }
 0x2ca   : > { %855 = vadd.xlane.f32.xlu2 %v1405_v59 }
 0x2cb   : > { %1408 = vpow2.f32 %v825_v6 }
 0x2cd   : > { %v1407_v9 = vpop.eup %1406 }
 0x2ce   : > { %v780_v12 = vpop.xlane.xlu0 %779  ;;  %v884_v13 = vmul.f32 %v1407_v9, %v1946_v24 }
 0x2cf   : > { %v796_v16 = vsub.f32 %v1953_v28, %v780_v12 }
 0x2d0   : > { %930 = vmatmul.f32.gmra.mxu0 %v884_v13 }
 0x2d1   : > { %v1409_v17 = vpop.eup %1408  ;;  %v827_v20 = vmul.f32 1.442695, %v796_v16 }
 0x2d2   : > { %857 = vadd.xlane.f32.xlu0 %v1409_v17 }
 0x2d3   : > { %1410 = vpow2.f32 %v827_v20 }
 0x2d9   : > { %v1411_v2 = vpop.eup %1410 }
 0x2da   : > { %859 = vadd.xlane.f32.xlu1 %v1411_v2 }
 0x315   : > { %v910_v8 = vpop.f32.mrf.mxu0  ;;  %v846_v27 = vpop.xlane.xlu2 %845 }
 0x316   : > { %1412 = vrcp.f32 %v846_v27  ;;  %1285 = vmatmul.msk.f32.vlgmr.msrb.gmra.mxu1 %vm308_vm0, %v910_v8 }
 0x31c   : > { %v1413_v24 = vpop.eup %1412 }
 0x31d   : > { %v913_v23 = vpop.f32.mrf.mxu0  ;;  %v848_v28 = vpop.xlane.xlu1 %847  ;;  %v885_v19 = vmul.f32 %v1413_v24, %v1960_v22 }
 0x31e   : > { %1414 = vrcp.f32 %v848_v28  ;;  %1286 = vmatmul.msk.f32.gmra.mxu1 %vm308_vm0, %v913_v23 }
 0x31f   : > { %933 = vmatmul.f32.gmra.mxu0 %v885_v19 }
 0x324   : > { %v1415_v15 = vpop.eup %1414 }
 0x325   : > { %v916_v11 = vpop.f32.mrf.mxu0  ;;  %v850_v5 = vpop.xlane.xlu2 %849  ;;  %v886_v1 = vmul.f32 %v1415_v15, %v1965_v14 }
 0x326   : > { %1416 = vrcp.f32 %v850_v5  ;;  %1287 = vmatmul.msk.f32.gmra.mxu1 %vm308_vm0, %v916_v11 }
 0x327   : > { %936 = vmatmul.f32.gmra.mxu0 %v886_v1 }
 0x32c   : > { %v1417_v63 = vpop.eup %1416 }
 0x32d   : > { %v919_v57 = vpop.f32.mrf.mxu0  ;;  %v852_v54 = vpop.xlane.xlu0 %851  ;;  %v887_v60 = vmul.f32 %v1417_v63, %v1970_v34 }
 0x32e   : > { %1418 = vrcp.f32 %v852_v54  ;;  %1288 = vmatmul.msk.f32.gmra.mxu1 %vm308_vm0, %v919_v57 }
 0x32f   : > { %939 = vmatmul.f32.gmra.mxu0 %v887_v60 }
 0x334   : > { %v1419_v7 = vpop.eup %1418 }
 0x335   : > { %v922_v51 = vpop.f32.mrf.mxu0  ;;  %v854_v22 = vpop.xlane.xlu1 %853  ;;  %v888_v49 = vmul.f32 %v1419_v7, %v1975_v41 }
 0x336   : > { %1420 = vrcp.f32 %v854_v22  ;;  %1289 = vmatmul.msk.f32.gmra.mxu1 %vm308_vm0, %v922_v51 }
 0x337   : > { %942 = vmatmul.f32.gmra.mxu0 %v888_v49 }
 0x33c   : > { %v1421_v18 = vpop.eup %1420 }
 0x33d   : > { %v856_v25 = vpop.xlane.xlu2 %855  ;;  %v925_v43 = vpop.f32.mrf.mxu0  ;;  %v889_v46 = vmul.f32 %v1421_v18, %v1989_v56 }
 0x33e   : > { %1422 = vrcp.f32 %v856_v25  ;;  %1290 = vmatmul.msk.f32.gmra.mxu1 %vm308_vm0, %v925_v43 }
 0x33f   : > { %945 = vmatmul.f32.gmra.mxu0 %v889_v46 }
 0x344   : > { %v1423_v10 = vpop.eup %1422 }
 0x345   : > { %v928_v14 = vpop.f32.mrf.mxu0  ;;  %v858_v26 = vpop.xlane.xlu0 %857  ;;  %v890_v29 = vmul.f32 %v1423_v10, %v1405_v59  ;;  %v1363_v59 = vld [vmem:[%s2066_s3 + $0x80] ss:$0 sm:$0xff] }
 0x346   : > { %1424 = vrcp.f32 %v858_v26  ;;  %1291 = vmatmul.msk.f32.gmra.mxu1 %vm308_vm0, %v928_v14 }
 0x347   : > { %948 = vmatmul.f32.gmra.mxu0 %v890_v29 }
 0x34c   : > { %v1425_v30 = vpop.eup %1424 }
 0x34d   : > { %v931_v31 = vpop.f32.mrf.mxu0  ;;  %v860_v32 = vpop.xlane.xlu1 %859  ;;  %v891_v33 = vmul.f32 %v1425_v30, %v1409_v17 }
 0x34e   : > { %1426 = vrcp.f32 %v860_v32  ;;  %1292 = vmatmul.msk.f32.gmra.mxu1 %vm308_vm0, %v931_v31 }
 0x34f   : > { %951 = vmatmul.f32.gmra.mxu0 %v891_v33 }
 0x354   : > { %v1427_v34 = vpop.eup %1426 }
 0x355   : > { %v892_v35 = vmul.f32 %v1427_v34, %v1411_v2 }
 0x357   : > { %954 = vmatmul.f32.gmra.mxu0 %v892_v35 }
 0x393   : > { %v1023_v42 = vpop.f32.mrf.mxu1 }
 0x39b   : > { %v1026_v47 = vpop.f32.mrf.mxu1 }
 0x39c   : > { %v934_v36 = vpop.f32.mrf.mxu0 }
 0x39d   : > { %1293 = vmatmul.msk.f32.gmra.mxu1 %vm308_vm0, %v934_v36 }
 0x3a3   : > { %v1029_v48 = vpop.f32.mrf.mxu1 }
 0x3a4   : > { %v937_v37 = vpop.f32.mrf.mxu0 }
 0x3a5   : > { %1294 = vmatmul.msk.f32.gmra.mxu1 %vm308_vm0, %v937_v37 }
 0x3ab   : > { %v1032_v50 = vpop.f32.mrf.mxu1 }
 0x3ac   : > { %v940_v38 = vpop.f32.mrf.mxu0 }
 0x3ad   : > { %1295 = vmatmul.msk.f32.gmra.mxu1 %vm308_vm0, %v940_v38 }
 0x3b3   : > { %v1035_v52 = vpop.f32.mrf.mxu1 }
 0x3b4   : > { %v943_v39 = vpop.f32.mrf.mxu0  ;;  %v1071_v3 = vadd.f32 %v1035_v52, %v1023_v42 }
 0x3b5   : > { %1296 = vmatmul.msk.f32.gmra.mxu1 %vm308_vm0, %v943_v39 }
 0x3bb   : > { %v1038_v55 = vpop.f32.mrf.mxu1 }
 0x3bc   : > { %v946_v40 = vpop.f32.mrf.mxu0  ;;  %v1072_v13 = vadd.f32 %v1038_v55, %v1026_v47 }
 0x3bd   : > { %1297 = vmatmul.msk.f32.gmra.mxu1 %vm308_vm0, %v946_v40 }
 0x3c3   : > { %v1041_v53 = vpop.f32.mrf.mxu1 }
 0x3c4   : > { %v949_v41 = vpop.f32.mrf.mxu0  ;;  %v1073_v21 = vadd.f32 %v1041_v53, %v1029_v48 }
 0x3c5   : > { %1298 = vmatmul.msk.f32.gmra.mxu1 %vm308_vm0, %v949_v41 }
 0x3cb   : > { %v1044_v56 = vpop.f32.mrf.mxu1 }
 0x3cc   : > { %v952_v44 = vpop.f32.mrf.mxu0  ;;  %v1074_v28 = vadd.f32 %v1044_v56, %v1032_v50 }
 0x3cd   : > { %1299 = vmatmul.msk.f32.gmra.mxu1 %vm308_vm0, %v952_v44 }
 0x3d4   : > { %v955_v45 = vpop.f32.mrf.mxu0 }
 0x3d5   : > { %1300 = vmatmul.msk.f32.gmra.mxu1 %vm308_vm0, %v955_v45 }
 0x41a   : > { %v1047_v58 = vpop.f32.mrf.mxu1 }
 0x41b   : > { %v1075_v4 = vadd.f32 %v1071_v3, %v1047_v58 }
 0x422   : > { %v1050_v61 = vpop.f32.mrf.mxu1 }
 0x423   : > { %v1076_v16 = vadd.f32 %v1072_v13, %v1050_v61 }
 0x42a   : > { %v1053_v62 = vpop.f32.mrf.mxu1 }
 0x42b   : > { %v1077_v8 = vadd.f32 %v1073_v21, %v1053_v62 }
 0x432   : > { %v1056_v0 = vpop.f32.mrf.mxu1 }
 0x433   : > { %v1078_v19 = vadd.f32 %v1074_v28, %v1056_v0 }
 0x43a   : > { %v1059_v6 = vpop.f32.mrf.mxu1 }
 0x43b   : > { %v1079_v9 = vadd.f32 %v1075_v4, %v1059_v6 }
 0x43d   : > { %v1084_v12 = vadd.f32 %v1363_v59, %v1079_v9 }
 0x43f   : > { %1088 = vst.msk [vmem:[%s247_s30] sm:$0xff] %vm308_vm0, %v1084_v12 }
 0x442   : > { %v1062_v17 = vpop.f32.mrf.mxu1 }
 0x443   : > { %v1080_v20 = vadd.f32 %v1076_v16, %v1062_v17 }
 0x445   : > { %v1085_v2 = vadd.f32 %v1363_v59, %v1080_v20 }
 0x447   : > { %1089 = vst.msk [vmem:[%s247_s30 + $0x8] sm:$0xff] %vm308_vm0, %v1085_v2 }
 0x44a   : > { %v1065_v27 = vpop.f32.mrf.mxu1 }
 0x44b   : > { %v1081_v24 = vadd.f32 %v1077_v8, %v1065_v27 }
 0x44d   : > { %v1086_v23 = vadd.f32 %v1363_v59, %v1081_v24 }
 0x44f   : > { %1090 = vst.msk [vmem:[%s247_s30 + $0x10] sm:$0xff] %vm308_vm0, %v1086_v23 }
 0x452   : > { %v1068_v15 = vpop.f32.mrf.mxu1 }
 0x453   : > { %v1082_v11 = vadd.f32 %v1078_v19, %v1068_v15 }
 0x455   : > { %v1087_v5 = vadd.f32 %v1363_v59, %v1082_v11 }
 0x457   : > { %1091 = vst.msk [vmem:[%s247_s30 + $0x18] sm:$0xff] %vm308_vm0, %v1087_v5 }
 0x458   : > { %1455 = shalt.err (!%p1452_p3)
}
 0x459   : > { %s1492_s16 = smov 128   ;;  %s1493_s26 = smov 8  }
 0x45a   : > { %1322 = dma.vmem_to_hbm [thread:$0]  (%p1562_p5), %s1106_s9, 512, %s1108_s10, %s1093_s22, %s1492_s16, %s1492_s16, %s1493_s26  }
 0x45b PF: > { %p1328_p4 = scmp.ge.s32.totalorder %s1490_s21, 2  ;;  %s1122_s30 = sand.u32 1, %s1478_s18  }
 0x45c   : > { %s1123_s6 = scalar_lea.sflag [#allocation3], %s1122_s30 }
 0x45d   : > { %p1325_p7 = pnand %p1328_p4, %p1566_p6 }
 0x45f   : > { %p1326_p8 = pneg %p1325_p7 }
 0x461   : > { %1473 = dma.done.wait (%p1326_p8), %s1123_s6, 512  }
 0x462   : > { %1475 = vsyncadd (%p1326_p8), %s1123_s6, 4294966784  ;;  %p15_p9 = scmp.ge.s32.totalorder %s1549_s24, 4   ;;  %s2071_s18 = smov %s1482_s19 }
 0x463   : > { %s2072_s19 = smov %s1486_s20  ;;  %s2073_s20 = smov %s1560_s27 }
 0x464   : > { %s2074_s21 = smov %s1549_s24  ;;  %17 = sbr.rel (!%p15_p9) target bundleno = 3 (0x3), region = 81 }
 0x469   :  { %1129 = vsyncpa [#allocation3], 1 }
 0x46a   :  { %1131 = vsyncpa [#allocation3 + $0x1], 1 }

</bundles_post_ra>
